<compile_context>
chip_gen: v7x
topology: tpu7x:2x2x1
jax: 0.10.0
libtpu: 0.0.40
codegen_flags: <defaults>
</compile_context>

<pallas_src>
import functools
from typing import List, Sequence, Tuple

import jax
import jax.numpy as jnp
from jax.experimental import pallas as pl
from jax.experimental.pallas import tpu as pltpu

LEAKY_SLOPE = 0.01   # PyTorch nn.LeakyReLU default negative_slope
LANE = 128
SUBLANE = 8
OUT_PAD = 8          # Q head padded to 8 lanes (real output dim is 1)


def _round_up(x: int, m: int) -> int:
    return ((x + m - 1) // m) * m


def _qnet_kernel(n_layers: int, *refs):
    """refs = (x_ref, w0, b0, w1, b1, ..., w_{L-1}, b_{L-1}, out_ref).

    Layers 0..L-2: Linear + LeakyReLU; layer L-1: plain Linear (Q-value head).
    All matmuls run natively in bf16 on the MXU with f32 accumulation; the
    bias add / activation run in f32 on the VPU.
    """
    x_ref = refs[0]
    out_ref = refs[-1]
    param_refs = refs[1:-1]

    x = x_ref[...]                                      # (tb, in_pad) bf16
    for layer in range(n_layers):
        w = param_refs[2 * layer][...]                  # bf16, VMEM-resident
        b = param_refs[2 * layer + 1][...]              # f32 (1, n_out)
        y = jnp.dot(x, w, preferred_element_type=jnp.float32) + b
        if layer < n_layers - 1:
            # LeakyReLU in f32, then bf16 operand for the next MXU pass.
            x = jnp.maximum(y, LEAKY_SLOPE * y).astype(jnp.bfloat16)
        else:
            out_ref[...] = y.astype(out_ref.dtype)      # (tb, OUT_PAD) f32


def init_qnet_params(key, dim_s: Sequence[int], dim_a: Sequence[int],
                     hidden_sizes: Sequence[int]) -> List[Tuple[jax.Array, jax.Array]]:
    """PyTorch-Linear-style init (uniform +-1/sqrt(fan_in)).

    Shapes (zero-padded so padding contributes exactly zero):
      * layer-0 fan_in padded to a multiple of 8 (sublane) only,
      * hidden dims padded to multiples of 128 (lanes),
      * Q head padded to OUT_PAD=8 lanes.
    Weights are stored as bf16 (MXU-native), biases as (1, out_pad) f32.
    """
    in_dim = sum(dim_s) + sum(dim_a)
    sizes = [in_dim] + list(hidden_sizes) + [1]
    padded = ([_round_up(in_dim, SUBLANE)]
              + [_round_up(h, LANE) for h in hidden_sizes]
              + [OUT_PAD])

    params = []
    for i in range(len(sizes) - 1):
        fan_in, fan_out = sizes[i], sizes[i + 1]
        kp_in, kp_out = padded[i], padded[i + 1]
        key, kw, kb = jax.random.split(key, 3)
        bound = 1.0 / float(fan_in) ** 0.5
        w = jax.random.uniform(kw, (fan_in, fan_out), jnp.float32, -bound, bound)
        b = jax.random.uniform(kb, (fan_out,), jnp.float32, -bound, bound)
        w_pad = jnp.zeros((kp_in, kp_out), jnp.float32).at[:fan_in, :fan_out].set(w)
        b_pad = jnp.zeros((1, kp_out), jnp.float32).at[0, :fan_out].set(b)
        params.append((w_pad.astype(jnp.bfloat16), b_pad))
    return params


def _default_tb(batch: int) -> int:
    """512-1024-row tiles to amortize per-step overhead; even step count for
    dual-TC parts (v7x); a single tile for small batches."""
    if batch <= 512:
        return _round_up(batch, SUBLANE)
    n_steps = max(2, pl.cdiv(batch, 1024))
    if n_steps % 2:
        n_steps += 1
    return _round_up(pl.cdiv(batch, n_steps), SUBLANE)


def qnet_forward(s_list: Sequence[jax.Array], a_list: Sequence[jax.Array],
                 params: List[Tuple[jax.Array, jax.Array]], *, tb: int = None):
    """Returns Q-values of shape (batch, 1)."""
    # Same concat order as the PyTorch module: cat([s_cat, a_cat], dim=1).
    x = jnp.concatenate(list(s_list) + list(a_list), axis=1)
    batch, in_dim = x.shape
    in_pad = params[0][0].shape[0]        # fan_in rounded to multiple of 8
    n_layers = len(params)

    if tb is None:
        tb = _default_tb(batch)
    tb = max(SUBLANE, _round_up(tb, SUBLANE))
    batch_pad = _round_up(batch, tb)

    # Single fused pad + bf16 cast: no f32 128-lane x_pad round trip via HBM.
    x_pad = jnp.zeros((batch_pad, in_pad), jnp.bfloat16)
    x_pad = x_pad.at[:batch, :in_dim].set(x.astype(jnp.bfloat16))

    flat_inputs = [x_pad]
    for w, b in params:
        flat_inputs += [w, b]

    grid = (batch_pad // tb,)
    in_specs = [pl.BlockSpec((tb, in_pad), lambda i: (i, 0))]
    for w, b in params:
        # Full-array blocks with constant index_map -> VMEM-resident params.
        in_specs.append(pl.BlockSpec(w.shape, lambda i: (0, 0)))
        in_specs.append(pl.BlockSpec(b.shape, lambda i: (0, 0)))
    out_spec = pl.BlockSpec((tb, OUT_PAD), lambda i: (i, 0))

    # Cost estimate for XLA scheduling around this custom call.
    flops = sum(2 * batch_pad * w.shape[0] * w.shape[1] for w, _ in params)
    param_bytes = sum(w.size * w.dtype.itemsize + b.size * b.dtype.itemsize
                      for w, b in params)
    bytes_accessed = (x_pad.size * x_pad.dtype.itemsize
                      + batch_pad * OUT_PAD * 4 + param_bytes)
    cost = pl.CostEstimate(flops=int(flops), transcendentals=0,
                           bytes_accessed=int(bytes_accessed))

    # VMEM budget from actual need: params (default double-buffered by the
    # pipeline), double-buffered input/output tiles, in-kernel f32/bf16
    # intermediates + headroom. Clamp to [16 MiB, 48 MiB] (safe on v5e/v6e's
    # 128 MiB and under v7x's 64 MiB physical VMEM).
    widest = max(max(w.shape[1] for w, _ in params), in_pad)
    act_bytes = (2 * tb * in_pad * 2          # bf16 input tiles (x2 buffers)
                 + 2 * tb * OUT_PAD * 4       # f32 output tiles (x2 buffers)
                 + 6 * tb * widest * 4)       # intermediates + headroom
    need = 2 * param_bytes + act_bytes
    vmem_limit = int(min(max(2 * need, 16 * 2**20), 48 * 2**20))

    kernel = functools.partial(_qnet_kernel, n_layers)
    out = pl.pallas_call(
        kernel,
        out_shape=jax.ShapeDtypeStruct((batch_pad, OUT_PAD), jnp.float32),
        grid=grid,
        in_specs=in_specs,
        out_specs=out_spec,
        compiler_params=pltpu.CompilerParams(
            dimension_semantics=("parallel",),   # batch tiles across TCs (v7x)
            vmem_limit_bytes=vmem_limit,
        ),
        cost_estimate=cost,
    )(*flat_inputs)
    return out[:batch, :1]


def qnet_reference(s_list, a_list, params):
    """Pure-JAX reference using the same padded params and the same bf16
    operand / f32 accumulation numerics as the kernel."""
    x = jnp.concatenate(list(s_list) + list(a_list), axis=1)
    in_pad = params[0][0].shape[0]
    xb = jnp.zeros((x.shape[0], in_pad), jnp.bfloat16)
    xb = xb.at[:, :x.shape[1]].set(x.astype(jnp.bfloat16))
    y = None
    for i, (w, b) in enumerate(params):
        y = jnp.dot(xb, w, preferred_element_type=jnp.float32) + b
        if i < len(params) - 1:
            xb = jnp.maximum(y, LEAKY_SLOPE * y).astype(jnp.bfloat16)
    return y[:, :1]


if __name__ == "__main__":
    # Small 2-agent MADDPG-style critic: per-agent state dim 12, action dim 4,
    # hidden layers [64, 64], scalar Q output.
    dim_s = [12, 12]
    dim_a = [4, 4]
    hidden_sizes = [64, 64]
    batch = 2

    key = jax.random.PRNGKey(0)
    key, *ks = jax.random.split(key, 1 + len(dim_s) + len(dim_a))
    s_list = [jax.random.normal(ks[i], (batch, d), jnp.float32)
              for i, d in enumerate(dim_s)]
    a_list = [jax.random.normal(ks[len(dim_s) + j], (batch, d), jnp.float32)
              for j, d in enumerate(dim_a)]

    params = init_qnet_params(key, dim_s, dim_a, hidden_sizes)

    out = jax.block_until_ready(qnet_forward(s_list, a_list, params))
    ref = qnet_reference(s_list, a_list, params)
    assert out.shape == (batch, 1)
    assert jnp.allclose(out, ref, atol=5e-3, rtol=5e-3), "mismatch vs reference (small batch)"

    # Non-multiple batch with an explicit small tile -> 3-step pipelined grid.
    big = 300
    kb = jax.random.PRNGKey(1)
    kb, *ks2 = jax.random.split(kb, 1 + len(dim_s) + len(dim_a))
    s_big = [jax.random.normal(ks2[i], (big, d), jnp.float32)
             for i, d in enumerate(dim_s)]
    a_big = [jax.random.normal(ks2[len(dim_s) + j], (big, d), jnp.float32)
             for j, d in enumerate(dim_a)]
    out_big = jax.block_until_ready(qnet_forward(s_big, a_big, params, tb=128))
    ref_big = qnet_reference(s_big, a_big, params)
    assert out_big.shape == (big, 1)
    assert jnp.allclose(out_big, ref_big, atol=5e-3, rtol=5e-3), "mismatch vs reference (tb=128)"

    # Larger batch exercising the default tile heuristic (2 even grid steps).
    huge = 1200
    kh = jax.random.PRNGKey(2)
    kh, *ks3 = jax.random.split(kh, 1 + len(dim_s) + len(dim_a))
    s_h = [jax.random.normal(ks3[i], (huge, d), jnp.float32)
           for i, d in enumerate(dim_s)]
    a_h = [jax.random.normal(ks3[len(dim_s) + j], (huge, d), jnp.float32)
           for j, d in enumerate(dim_a)]
    out_h = jax.block_until_ready(qnet_forward(s_h, a_h, params))
    ref_h = qnet_reference(s_h, a_h, params)
    assert out_h.shape == (huge, 1)
    assert jnp.allclose(out_h, ref_h, atol=5e-3, rtol=5e-3), "mismatch vs reference (default tb)"

    print("KERNEL_OK")
</pallas_src>

<mosaic_0001>
module attributes {stable_mosaic.version = 11 : i64} {
  func.func @_qnet_kernel(%arg0: i32, %arg1: memref<8x32xbf16, #tpu.memory_space<vmem>>, %arg2: memref<32x128xbf16, #tpu.memory_space<vmem>>, %arg3: memref<1x128xf32, #tpu.memory_space<vmem>>, %arg4: memref<128x128xbf16, #tpu.memory_space<vmem>>, %arg5: memref<1x128xf32, #tpu.memory_space<vmem>>, %arg6: memref<128x8xbf16, #tpu.memory_space<vmem>>, %arg7: memref<1x8xf32, #tpu.memory_space<vmem>>, %arg8: memref<8x8xf32, #tpu.memory_space<vmem>>) attributes {dimension_semantics = [#tpu.dimension_semantics<parallel>], iteration_bounds = array<i64: 1>, scalar_prefetch = 0 : i64, scratch_operands = 0 : i64, tpu.core_type = #tpu.core_type<tc>, window_params = [{transform_indices = @transform_0, window_bounds = array<i64: 8, 32>}, {pipeline_mode = #tpu.pipeline_mode<synchronous>, transform_indices = @transform_1, window_bounds = array<i64: 32, 128>}, {pipeline_mode = #tpu.pipeline_mode<synchronous>, transform_indices = @transform_2, window_bounds = array<i64: 1, 128>}, {pipeline_mode = #tpu.pipeline_mode<synchronous>, transform_indices = @transform_3, window_bounds = array<i64: 128, 128>}, {pipeline_mode = #tpu.pipeline_mode<synchronous>, transform_indices = @transform_4, window_bounds = array<i64: 1, 128>}, {pipeline_mode = #tpu.pipeline_mode<synchronous>, transform_indices = @transform_5, window_bounds = array<i64: 128, 8>}, {pipeline_mode = #tpu.pipeline_mode<synchronous>, transform_indices = @transform_6, window_bounds = array<i64: 1, 8>}, {transform_indices = @transform_7, window_bounds = array<i64: 8, 8>}]} {
    %c0 = arith.constant 0 : index
    %c0_0 = arith.constant 0 : index
    %0 = vector.load %arg1[%c0, %c0_0] : memref<8x32xbf16, #tpu.memory_space<vmem>>, vector<8x32xbf16>
    %c0_1 = arith.constant 0 : index
    %c0_2 = arith.constant 0 : index
    %1 = vector.load %arg2[%c0_1, %c0_2] : memref<32x128xbf16, #tpu.memory_space<vmem>>, vector<32x128xbf16>
    %c0_3 = arith.constant 0 : index
    %c0_4 = arith.constant 0 : index
    %2 = vector.load %arg3[%c0_3, %c0_4] : memref<1x128xf32, #tpu.memory_space<vmem>>, vector<1x128xf32>
    %cst = arith.constant dense<0.000000e+00> : vector<8x128xf32>
    %3 = tpu.matmul %0, %1, %cst {dimension_numbers = #tpu.dot_dimension_numbers<[1], [0], [0], [1], [0, 0, 1, 1], [], []>} : vector<8x32xbf16>, vector<32x128xbf16>, vector<8x128xf32> -> vector<8x128xf32>
    %4 = vector.broadcast %2 : vector<1x128xf32> to vector<8x128xf32>
    %5 = arith.addf %3, %4 : vector<8x128xf32>
    %cst_5 = arith.constant 0.00999999977 : f32
    %6 = vector.broadcast %cst_5 : f32 to vector<8x128xf32>
    %7 = arith.mulf %6, %5 : vector<8x128xf32>
    %8 = arith.maximumf %5, %7 : vector<8x128xf32>
    %9 = arith.truncf %8 : vector<8x128xf32> to vector<8x128xbf16>
    %c0_6 = arith.constant 0 : index
    %c0_7 = arith.constant 0 : index
    %10 = vector.load %arg4[%c0_6, %c0_7] : memref<128x128xbf16, #tpu.memory_space<vmem>>, vector<128x128xbf16>
    %c0_8 = arith.constant 0 : index
    %c0_9 = arith.constant 0 : index
    %11 = vector.load %arg5[%c0_8, %c0_9] : memref<1x128xf32, #tpu.memory_space<vmem>>, vector<1x128xf32>
    %cst_10 = arith.constant dense<0.000000e+00> : vector<8x128xf32>
    %12 = tpu.matmul %9, %10, %cst_10 {dimension_numbers = #tpu.dot_dimension_numbers<[1], [0], [0], [1], [0, 0, 1, 1], [], []>} : vector<8x128xbf16>, vector<128x128xbf16>, vector<8x128xf32> -> vector<8x128xf32>
    %13 = vector.broadcast %11 : vector<1x128xf32> to vector<8x128xf32>
    %14 = arith.addf %12, %13 : vector<8x128xf32>
    %cst_11 = arith.constant 0.00999999977 : f32
    %15 = vector.broadcast %cst_11 : f32 to vector<8x128xf32>
    %16 = arith.mulf %15, %14 : vector<8x128xf32>
    %17 = arith.maximumf %14, %16 : vector<8x128xf32>
    %18 = arith.truncf %17 : vector<8x128xf32> to vector<8x128xbf16>
    %c0_12 = arith.constant 0 : index
    %c0_13 = arith.constant 0 : index
    %19 = vector.load %arg6[%c0_12, %c0_13] : memref<128x8xbf16, #tpu.memory_space<vmem>>, vector<128x8xbf16>
    %c0_14 = arith.constant 0 : index
    %c0_15 = arith.constant 0 : index
    %20 = vector.load %arg7[%c0_14, %c0_15] : memref<1x8xf32, #tpu.memory_space<vmem>>, vector<1x8xf32>
    %cst_16 = arith.constant dense<0.000000e+00> : vector<8x8xf32>
    %21 = tpu.matmul %18, %19, %cst_16 {dimension_numbers = #tpu.dot_dimension_numbers<[1], [0], [0], [1], [0, 0, 1, 1], [], []>} : vector<8x128xbf16>, vector<128x8xbf16>, vector<8x8xf32> -> vector<8x8xf32>
    %22 = vector.broadcast %20 : vector<1x8xf32> to vector<8x8xf32>
    %23 = arith.addf %21, %22 : vector<8x8xf32>
    %c0_17 = arith.constant 0 : index
    %c0_18 = arith.constant 0 : index
    %24 = vector.load %arg8[%c0_17, %c0_18] : memref<8x8xf32, #tpu.memory_space<vmem>>, vector<8x8xf32>
    tpu.vector_store %arg8[%c0_17, %c0_18], %23 {strides = array<i32>} : memref<8x8xf32, #tpu.memory_space<vmem>>, vector<8x8xf32>,
    return
  }
  func.func @transform_0(%arg0: i32) -> (i32, i32) {
    %c0_i32 = arith.constant 0 : i32
    %c0_i32_0 = arith.constant 0 : i32
    return %arg0, %c0_i32 : i32, i32
  }
  func.func @transform_1(%arg0: i32) -> (i32, i32) {
    %c0_i32 = arith.constant 0 : i32
    %c0_i32_0 = arith.constant 0 : i32
    %c0_i32_1 = arith.constant 0 : i32
    return %c0_i32, %c0_i32_0 : i32, i32
  }
  func.func @transform_2(%arg0: i32) -> (i32, i32) {
    %c0_i32 = arith.constant 0 : i32
    %c0_i32_0 = arith.constant 0 : i32
    %c0_i32_1 = arith.constant 0 : i32
    return %c0_i32, %c0_i32_0 : i32, i32
  }
  func.func @transform_3(%arg0: i32) -> (i32, i32) {
    %c0_i32 = arith.constant 0 : i32
    %c0_i32_0 = arith.constant 0 : i32
    %c0_i32_1 = arith.constant 0 : i32
    return %c0_i32, %c0_i32_0 : i32, i32
  }
  func.func @transform_4(%arg0: i32) -> (i32, i32) {
    %c0_i32 = arith.constant 0 : i32
    %c0_i32_0 = arith.constant 0 : i32
    %c0_i32_1 = arith.constant 0 : i32
    return %c0_i32, %c0_i32_0 : i32, i32
  }
  func.func @transform_5(%arg0: i32) -> (i32, i32) {
    %c0_i32 = arith.constant 0 : i32
    %c0_i32_0 = arith.constant 0 : i32
    %c0_i32_1 = arith.constant 0 : i32
    return %c0_i32, %c0_i32_0 : i32, i32
  }
  func.func @transform_6(%arg0: i32) -> (i32, i32) {
    %c0_i32 = arith.constant 0 : i32
    %c0_i32_0 = arith.constant 0 : i32
    %c0_i32_1 = arith.constant 0 : i32
    return %c0_i32, %c0_i32_0 : i32, i32
  }
  func.func @transform_7(%arg0: i32) -> (i32, i32) {
    %c0_i32 = arith.constant 0 : i32
    %c0_i32_0 = arith.constant 0 : i32
    return %arg0, %c0_i32 : i32, i32
  }
}

</mosaic_0001>

<bundles_post_ra>
// kernel: tpu_custom_call.1
= control target key start
LH: loop header
LB: loop body
LE: loop exit
PB: predicated region body
PF: predicated region fallthrough
CT: control target
= control target key end

     0   :  { %12 = vsyncpa [#allocation3], 0  ;;  %s672_s0 = inlined_call_operand.vmem [shape: bf16[8,32], index: 0, kind: input, shape index: {}]   ;;  %s673_s1 = inlined_call_operand.hbm [shape: bf16[32,128], index: 1, kind: input, shape index: {}]   ;;  %s674_s2 = inlined_call_operand.vmem [shape: f32[1,128], index: 2, kind: input, shape index: {}]   ;;  %s675_s3 = inlined_call_operand.vmem [shape: bf16[128,128], index: 3, kind: input, shape index: {}]   ;;  %s676_s4 = inlined_call_operand.vmem [shape: f32[1,128], index: 4, kind: input, shape index: {}]   ;;  %s677_s5 = inlined_call_operand.vmem [shape: bf16[128,8], index: 5, kind: input, shape index: {}]   ;;  %s678_s6 = inlined_call_operand.vmem [shape: f32[1,8], index: 6, kind: input, shape index: {}]   ;;  %s679_s7 = inlined_call_operand.hbm [shape: f32[8,8], index: 7, kind: output, shape index: {}]  }
   0x1   :  { %13 = vsyncpa [#allocation4], 0  ;;  %s518_s24 = smov [#allocation2]   ;;  %s470_s28 = scalar_lea.hbm %s673_s1, 256 }
   0x2   :  { %s21_s25 = sshll.u32 %s518_s24, 4  ;;  %p471_p0 = scmp.ne.s32.totalorder %s673_s1, %s470_s28  ;;  %s22_s25 = int_to_ptr.vmem [resolvable:$true] %s21_s25 }
   0x3   :  { %p474_p1 = scmp.lt.u32.totalorder %s470_s28, %s673_s1 }
   0x5   :  { %p476_p2 = pnand %p474_p1, %p471_p0 }
   0x7   :  { %479 = shalt.err (!%p476_p2)
}
   0x8   :  { %s480_s10 = scalar_lea.vmem %s22_s25, 256  ;;  %p485_p4 = scmp.lt.s32.totalorder %s22_s25, %s22_s25 }
   0x9   :  { %p481_p3 = scmp.ne.s32.totalorder %s22_s25, %s480_s10  ;;  %p486_p5 = scmp.lt.s32.totalorder %s480_s10, %s480_s10 }
   0xb   :  { %p487_p6 = por %p486_p5, %p485_p4 }
   0xd   :  { %p488_p7 = pnand %p487_p6, %p481_p3 }
   0xf   :  { %491 = shalt.err (!%p488_p7)
}
  0x10   :  { %s519_s11 = smov 64   ;;  %s520_s12 = smov 4  }
  0x11   :  { %27 = dma.hbm_to_vmem [thread:$0]  %s673_s1, 256, %s22_s25, [#allocation3], %s519_s11, %s519_s11, %s520_s12  }
  0x12   :  { %514 = dma.done.wait [#allocation3], 256  }
  0x13   :  { %515 = vsyncadd [#allocation3], 4294967040  ;;  %v521_v0 = vmov 0.0   ;;  %vm522_vm0 = vmmov 0   ;;  %v452_v1 = vld [vmem:[#allocation2] sm:$0xff]   ;;  %v453_v2 = vld [vmem:[#allocation2 + $0x8] sm:$0xff]  }
  0x14   :  { %398 = vmatprep.subr.bf16.mxu0 %v521_v0  ;;  %402 = vmatprep.mubr.msk.bf16.mxu0 %vm522_vm0, %v521_v0  ;;  %v454_v3 = vld [vmem:[%s675_s3] sm:$0xff]   ;;  %vm66_vm1 = vcmask 261120   ;;  %v455_v4 = vld [vmem:[%s675_s3 + $0x8] sm:$0xff]   ;;  %v456_v6 = vld [vmem:[%s675_s3 + $0x10] sm:$0xff]   ;;  %s523_s26 = smov [#allocation5]   ;;  %vm338_vm2 = vcmask 64512  }
  0x15   :  { %406 = vmatprep.subr.bf16.mxu1 %v521_v0  ;;  %422 = vmatprep.mubr.msk.bf16.mxu1 %vm522_vm0, %v521_v0  ;;  %v42_v5 = vld [vmem:[%s672_s0] sm:$0xf]  ;;  %v457_v7 = vld [vmem:[%s675_s3 + $0x18] sm:$0xff]   ;;  %v459_v9 = vld [vmem:[%s675_s3 + $0x28] sm:$0xff]  }
  0x16   :  { %399 = vmatpush3.bf16.msra.mxu0 %v452_v1  ;;  %407 = vmatpush3.bf16.msra.mxu1 %v454_v3  ;;  %v458_v8 = vld [vmem:[%s675_s3 + $0x20] sm:$0xff]   ;;  %v460_v10 = vld [vmem:[%s675_s3 + $0x30] sm:$0xff]   ;;  %v461_v11 = vld [vmem:[%s675_s3 + $0x38] sm:$0xff]  }
  0x17   :  { %400 = vmatprep.subr.bf16.mxu0 %v521_v0  ;;  %408 = vmatprep.subr.bf16.mxu1 %v521_v0  ;;  %v462_v12 = vld [vmem:[%s677_s5] sm:$0xff]   ;;  %v463_v13 = vld [vmem:[%s677_s5 + $0x8] sm:$0xff]   ;;  %v464_v14 = vld [vmem:[%s677_s5 + $0x10] sm:$0xff]  }
  0x18   :  { %v465_v15 = vld [vmem:[%s677_s5 + $0x18] sm:$0xff]   ;;  %v466_v16 = vld [vmem:[%s677_s5 + $0x20] sm:$0xff]   ;;  %v467_v17 = vld [vmem:[%s677_s5 + $0x28] sm:$0xff]  }
  0x19   :  { %v355_v18 = vld [vmem:[%s674_s2] ss:$0 sm:$0xff]  ;;  %v468_v27 = vld [vmem:[%s677_s5 + $0x30] sm:$0xff]   ;;  %v469_v28 = vld [vmem:[%s677_s5 + $0x38] sm:$0xff]   ;;  %s346_s5 = sshll.u32 %s523_s26, 4  ;;  %s347_s5 = int_to_ptr.vmem [resolvable:$true] %s346_s5 }
  0x1a   :  { %401 = vmatpush3.bf16.msra.mxu0 %v453_v2  ;;  %409 = vmatpush3.bf16.msra.mxu1 %v455_v4  ;;  %v359_v29 = vld [vmem:[%s676_s4] ss:$0 sm:$0xff]  ;;  %s492_s4 = scalar_lea.vmem %s347_s5, 128  ;;  %p497_p9 = scmp.lt.s32.totalorder %s347_s5, %s347_s5 }
  0x1b   :  { %426 = vmatprep.subr.bf16.mxu0 %v521_v0  ;;  %410 = vmatprep.subr.bf16.mxu1 %v521_v0  ;;  %v368_v38 = vld [vmem:[%s678_s6] ss:$0 sm:$0xff]  ;;  %p493_p8 = scmp.ne.s32.totalorder %s347_s5, %s492_s4  ;;  %p498_p10 = scmp.lt.s32.totalorder %s492_s4, %s492_s4 }
  0x1d   :  { %403 = vmatmul.mubr.msk.bf16.vlgmr.msra.gmra.mrb[0].mxu0 %vm66_vm1, %v42_v5  ;;  %p499_p11 = por %p498_p10, %p497_p9 }
  0x1e   :  { %442 = vmatprep.mubr.msk.bf16.mxu0 %vm522_vm0, %v521_v0  ;;  %411 = vmatpush3.bf16.msra.mxu1 %v456_v6 }
  0x1f   :  { %412 = vmatprep.subr.bf16.mxu1 %v521_v0  ;;  %427 = vmatpush3.bf16.msra.mxu0 %v462_v12  ;;  %p500_p12 = pnand %p499_p11, %p493_p8 }
  0x20   :  { %428 = vmatprep.subr.bf16.mxu0 %v521_v0 }
  0x22   :  { %413 = vmatpush3.bf16.msra.mxu1 %v457_v7 }
  0x23   :  { %414 = vmatprep.subr.bf16.mxu1 %v521_v0  ;;  %429 = vmatpush3.bf16.msra.mxu0 %v463_v13 }
  0x24   :  { %430 = vmatprep.subr.bf16.mxu0 %v521_v0 }
  0x26   :  { %415 = vmatpush3.bf16.msra.mxu1 %v458_v8 }
  0x27   :  { %416 = vmatprep.subr.bf16.mxu1 %v521_v0  ;;  %431 = vmatpush3.bf16.msra.mxu0 %v464_v14 }
  0x28   :  { %432 = vmatprep.subr.bf16.mxu0 %v521_v0 }
  0x2a   :  { %417 = vmatpush3.bf16.msra.mxu1 %v459_v9 }
  0x2b   :  { %418 = vmatprep.subr.bf16.mxu1 %v521_v0  ;;  %433 = vmatpush3.bf16.msra.mxu0 %v465_v15 }
  0x2c   :  { %434 = vmatprep.subr.bf16.mxu0 %v521_v0 }
  0x2e   :  { %419 = vmatpush3.bf16.msra.mxu1 %v460_v10 }
  0x2f   :  { %420 = vmatprep.subr.bf16.mxu1 %v521_v0  ;;  %435 = vmatpush3.bf16.msra.mxu0 %v466_v16 }
  0x30   :  { %436 = vmatprep.subr.bf16.mxu0 %v521_v0 }
  0x32   :  { %421 = vmatpush3.bf16.msra.mxu1 %v461_v11 }
  0x33   :  { %437 = vmatpush3.bf16.msra.mxu0 %v467_v17 }
  0x34   :  { %438 = vmatprep.subr.bf16.mxu0 %v521_v0 }
  0x37   :  { %439 = vmatpush3.bf16.msra.mxu0 %v468_v27 }
  0x38   :  { %440 = vmatprep.subr.bf16.mxu0 %v521_v0 }
  0x3b   :  { %441 = vmatpush3.bf16.msra.mxu0 %v469_v28 }
  0xf0   :  { %v104_v19 = vpop.f32.mrb[0].mxu0 }
  0xf1   :  { %v105_v20 = vadd.f32 %v355_v18, %v104_v19  ;;  %v404_v21 = vpop.f32.mrb[1].mxu0 }
  0xf2   :  { %v107_v22 = vpop.f32.mrb[2].mxu0 }
  0xf3   :  { %v110_v23 = vmul.f32 0.01, %v105_v20  ;;  %v405_v24 = vpop.f32.mrb[3].mxu0 }
  0xf5   :  { %v111_v25 = vmax.f32 %v105_v20, %v110_v23 }
  0xf7   :  { %v112_v26 = vpack.c.bf16 %v111_v25, %v111_v25 }
  0xf9   :  { %423 = vmatmul.mubr.bf16.vlgmr.msra.gmra.mrb[0].mxu1 %v112_v26 }
 0x1cc   :  { %v218_v30 = vpop.f32.mrb[0].mxu1 }
 0x1cd   :  { %v219_v31 = vadd.f32 %v359_v29, %v218_v30  ;;  %v424_v32 = vpop.f32.mrb[1].mxu1 }
 0x1ce   :  { %v221_v33 = vpop.f32.mrb[2].mxu1 }
 0x1cf   :  { %v224_v34 = vmul.f32 0.01, %v219_v31  ;;  %v425_v35 = vpop.f32.mrb[3].mxu1 }
 0x1d1   :  { %v225_v36 = vmax.f32 %v219_v31, %v224_v34 }
 0x1d3   :  { %v226_v37 = vpack.c.bf16 %v225_v36, %v225_v36 }
 0x1d5   :  { %443 = vmatmul.mubr.bf16.vlgmr.msra.gmra.mrb[4].mxu0 %v226_v37 }
 0x2a8   :  { %v332_v39 = vpop.f32.mrb[4].mxu0 }
 0x2a9   :  { %v333_v40 = vadd.f32 %v368_v38, %v332_v39  ;;  %v444_v41 = vpop.f32.mrb[5].mxu0 }
 0x2aa   :  { %v335_v42 = vpop.f32.mrb[6].mxu0 }
 0x2ab   :  { %v445_v43 = vpop.f32.mrb[7].mxu0  ;;  %339 = vst.msk [vmem:[#allocation5] sm:$0xff] %vm338_vm2, %v333_v40 }
 0x2ac   :  { %503 = shalt.err (!%p500_p12)
}
 0x2ad   :  { %s504_s6 = scalar_lea.hbm %s679_s7, 128 }
 0x2ae   :  { %p505_p13 = scmp.ne.s32.totalorder %s679_s7, %s504_s6  ;;  %p508_p0 = scmp.lt.u32.totalorder %s504_s6, %s679_s7 }
 0x2b0   :  { %p510_p1 = pnand %p508_p0, %p505_p13 }
 0x2b2   :  { %513 = shalt.err (!%p510_p1)
}
 0x2b3   :  { %349 = dma.vmem_to_hbm [thread:$0]  %s347_s5, 128, %s679_s7, [#allocation4]  }
 0x2b4   :  { %516 = dma.done.wait [#allocation4], 128  }
 0x2b5   :  { %517 = vsyncadd [#allocation4], 4294967168 }
 0x2b6   :  { %353 = vsyncpa [#allocation3], 1 }
 0x2b7   :  { %354 = vsyncpa [#allocation4], 1 }

</bundles_post_ra>
